<compile_context>
chip_gen: v5e
topology: v5e:2x2
jax: 0.10.0
libtpu: 0.0.40
codegen_flags: <defaults>
</compile_context>

<pallas_src>
import jax
import jax.numpy as jnp
from jax.experimental import pallas as pl
from jax.experimental.pallas import tpu as pltpu


def _round_up(x, m):
    return ((x + m - 1) // m) * m


def _cdiv(a, b):
    return (a + b - 1) // b


def _conv_kernel(xm_ref, xh_ref, w_ref, b_ref, o_ref, slab_ref):
    """One grid step: out_tile = sum_s slab[off_s : off_s + S] @ W[s] + bias.

    xm_ref  : (1, S, K4)    main tile of the flattened space-to-depth input (S = TOH*OWC)
    xh_ref  : (1, OWC, K4)  halo rows (the OWC flattened rows following the main tile)
    w_ref   : (4, K4, TN)   per-shift weight matrices (zero rows where a tap is unused)
    b_ref   : (1, TN)       bias tile
    o_ref   : (1, S, TN)    output tile (lane-dense, TN multiple of 128)
    slab_ref: (S+OWC+8, K4) VMEM scratch
    """
    S = xm_ref.shape[1]
    OWC = xh_ref.shape[1]
    K4 = xm_ref.shape[2]

    # Assemble main + halo into one contiguous slab (all stores are 8-row aligned).
    slab_ref[0:S, :] = xm_ref[0]
    slab_ref[S:S + OWC, :] = xh_ref[0]
    slab_ref[S + OWC:, :] = jnp.zeros(
        (slab_ref.shape[0] - (S + OWC), K4), slab_ref.dtype)

    # Four shifted views -> four accumulated MXU dots with f32 accumulation.
    # Shift offsets in flattened (row*OWC + col) space: 0, +1 col, +1 row, +1 row +1 col.
    acc = jnp.dot(slab_ref[0:S, :], w_ref[0],
                  preferred_element_type=jnp.float32)
    acc = acc + jnp.dot(slab_ref[1:S + 1, :], w_ref[1],
                        preferred_element_type=jnp.float32)
    acc = acc + jnp.dot(slab_ref[OWC:OWC + S, :], w_ref[2],
                        preferred_element_type=jnp.float32)
    acc = acc + jnp.dot(slab_ref[OWC + 1:OWC + 1 + S, :], w_ref[3],
                        preferred_element_type=jnp.float32)

    o_ref[0] = (acc + b_ref[...].astype(jnp.float32)).astype(o_ref.dtype)


def downsample_forward(x_nchw, w_oihw, bias):
    """Conv2d(dim, dim, kernel=3, stride=2, padding=1) forward. NCHW in / NCHW out."""
    N, C, H, W = x_nchw.shape
    Cout, Cin, KH, KW = w_oihw.shape
    assert (Cin, KH, KW) == (C, 3, 3)

    OH = (H - 1) // 2 + 1
    OW = (W - 1) // 2 + 1

    # ---- tiling choices ----------------------------------------------------
    OWC = _round_up(OW + 1, 8)            # stored cols (incl. +1 halo col), 8-aligned
    toh_target = max(1, 1024 // OWC)      # aim for ~1k-row M tiles
    nt = _cdiv(OH, min(toh_target, OH))
    TOH = _cdiv(OH, nt)
    OHpad = nt * TOH
    S = TOH * OWC                         # M rows per grid step (incl. discarded cols)
    K4 = 4 * C
    CoutP = _round_up(Cout, 128)          # lane-dense output channels
    TN = 256 if CoutP % 256 == 0 else 128
    nco = CoutP // TN

    dtype = x_nchw.dtype
    # TODO(synk): optional bf16 cast of activations/weights (f32 accumulate) would halve
    # HBM traffic on v6e/v7x; kept f32 here to match the f32 reference check exactly.

    # ---- glue: NHWC, zero-pad, space-to-depth(2), flatten rows --------------
    x = jnp.transpose(x_nchw, (0, 2, 3, 1))                         # NHWC
    Hp = 2 * (OHpad + 1)
    Wp = 2 * OWC
    xp = jnp.pad(x, ((0, 0), (1, Hp - 1 - H), (1, Wp - 1 - W), (0, 0)))
    # xs2d[n, i*OWC + j, (2*rp+cp)*C + c] = xp[n, 2i+rp, 2j+cp, c]
    xs2d = xp.reshape(N, OHpad + 1, 2, OWC, 2, C)
    xs2d = xs2d.transpose(0, 1, 3, 2, 4, 5).reshape(N, (OHpad + 1) * OWC, K4)

    # ---- weights: per-shift (4, 4C, CoutP) matrices, bias (1, CoutP) --------
    wfull = jnp.zeros((4, K4, CoutP), dtype)
    for kh in range(3):
        dr, rp = divmod(kh, 2)
        for kw in range(3):
            dc, cp = divmod(kw, 2)
            s = 2 * dr + dc                     # spatial shift index
            p = 2 * rp + cp                     # space-to-depth phase index
            wfull = wfull.at[s, p * C:(p + 1) * C, :Cout].set(
                jnp.transpose(w_oihw[:, :, kh, kw]).astype(dtype))
    bfull = jnp.zeros((1, CoutP), dtype).at[0, :Cout].set(bias.astype(dtype))

    # ---- Pallas call ---------------------------------------------------------
    bytes_f = jnp.dtype(dtype).itemsize
    vmem_est = bytes_f * (
        2 * S * K4 + 2 * OWC * K4             # double-buffered input blocks
        + 2 * 4 * K4 * TN + 2 * TN            # double-buffered weights / bias
        + 2 * S * TN                          # double-buffered output block
        + (S + OWC + 8) * K4                  # slab scratch
        + 4 * S * K4 + S * TN)                # matmul operand staging / accumulator
    compiler_kwargs = {}
    if vmem_est > 28 * 1024 * 1024:
        # TODO(synk): for very large dim (weight tile near VMEM capacity on v7x) add a
        # K grid axis with a pl.when-initialized accumulator instead of raising the limit.
        compiler_kwargs["vmem_limit_bytes"] = int(min(vmem_est, 110 * 1024 * 1024))

    flops = 2 * N * OH * OW * 9 * C * Cout
    bytes_accessed = int(
        (xs2d.size + wfull.size + N * OHpad * OWC * CoutP) * bytes_f)

    out = pl.pallas_call(
        _conv_kernel,
        out_shape=jax.ShapeDtypeStruct((N, OHpad * OWC, CoutP), dtype),
        grid_spec=pltpu.PrefetchScalarGridSpec(
            num_scalar_prefetch=0,
            # Cout tile outermost, row tile innermost: weights/bias keep the same block
            # index across the whole (image, row-tile) sweep and are not re-fetched.
            grid=(nco, N, nt),
            in_specs=[
                pl.BlockSpec((1, S, K4), lambda j, n, t: (n, t, 0)),
                pl.BlockSpec((1, OWC, K4), lambda j, n, t: (n, (t + 1) * TOH, 0)),
                pl.BlockSpec((4, K4, TN), lambda j, n, t: (0, 0, j)),
                pl.BlockSpec((1, TN), lambda j, n, t: (0, j)),
            ],
            out_specs=pl.BlockSpec((1, S, TN), lambda j, n, t: (n, t, j)),
            scratch_shapes=[pltpu.VMEM((S + OWC + 8, K4), dtype)],
        ),
        compiler_params=pltpu.CompilerParams(
            dimension_semantics=("parallel", "parallel", "parallel"),
            **compiler_kwargs),
        cost_estimate=pl.CostEstimate(
            flops=flops, transcendentals=0, bytes_accessed=bytes_accessed),
    )(xs2d, xs2d, wfull, bfull)

    # ---- glue: un-flatten, drop padded rows/cols/channels, back to NCHW -----
    out = out.reshape(N, OHpad, OWC, CoutP)[:, :OH, :OW, :Cout]
    return jnp.transpose(out, (0, 3, 1, 2))


if __name__ == "__main__":
    key = jax.random.PRNGKey(0)
    kx, kw, kb = jax.random.split(key, 3)

    N, C, H, W = 2, 4, 16, 16
    x = jax.random.normal(kx, (N, C, H, W), dtype=jnp.float32)

    # Deterministic parameter init mirroring nn.Conv2d default (uniform +/- 1/sqrt(fan_in))
    fan_in = C * 3 * 3
    bound = 1.0 / (fan_in ** 0.5)
    w = jax.random.uniform(kw, (C, C, 3, 3), jnp.float32, minval=-bound, maxval=bound)
    b = jax.random.uniform(kb, (C,), jnp.float32, minval=-bound, maxval=bound)

    fwd = jax.jit(downsample_forward)
    y = jax.block_until_ready(fwd(x, w, b))

    # Reference check against XLA conv (same semantics as F.conv2d stride=2 pad=1)
    ref = jax.lax.conv_general_dilated(
        x, w, window_strides=(2, 2), padding=((1, 1), (1, 1)),
        dimension_numbers=("NCHW", "OIHW", "NCHW"),
    ) + b.reshape(1, C, 1, 1)

    assert y.shape == (N, C, H // 2, W // 2), y.shape
    assert jnp.allclose(y, ref, atol=1e-4, rtol=1e-4), "mismatch vs reference conv"
    print("KERNEL_OK")
</pallas_src>

<mosaic_0001>
module attributes {stable_mosaic.version = 11 : i64} {
  func.func @_conv_kernel(%arg0: i32, %arg1: i32, %arg2: i32, %arg3: memref<1x128x16xf32, #tpu.memory_space<vmem>>, %arg4: memref<1x16x16xf32, #tpu.memory_space<vmem>>, %arg5: memref<4x16x128xf32, #tpu.memory_space<vmem>>, %arg6: memref<1x128xf32, #tpu.memory_space<vmem>>, %arg7: memref<1x128x128xf32, #tpu.memory_space<vmem>>, %arg8: memref<152x16xf32, #tpu.memory_space<vmem>>) attributes {dimension_semantics = [#tpu.dimension_semantics<parallel>, #tpu.dimension_semantics<parallel>, #tpu.dimension_semantics<parallel>], iteration_bounds = array<i64: 1, 2, 1>, scalar_prefetch = 0 : i64, scratch_operands = 1 : i64, tpu.core_type = #tpu.core_type<tc>, window_params = [{transform_indices = @transform_0, window_bounds = array<i64: 1, 128, 16>}, {transform_indices = @transform_1, window_bounds = array<i64: 1, 16, 16>}, {transform_indices = @transform_2, window_bounds = array<i64: 4, 16, 128>}, {transform_indices = @transform_3, window_bounds = array<i64: 1, 128>}, {transform_indices = @transform_4, window_bounds = array<i64: 1, 128, 128>}]} {
    %c0 = arith.constant 0 : index
    %c0_0 = arith.constant 0 : index
    %c0_1 = arith.constant 0 : index
    %0 = vector.load %arg3[%c0, %c0_0, %c0_1] : memref<1x128x16xf32, #tpu.memory_space<vmem>>, vector<1x128x16xf32>
    %1 = vector.shape_cast %0 : vector<1x128x16xf32> to vector<128x16xf32>
    %c0_2 = arith.constant 0 : index
    %c0_3 = arith.constant 0 : index
    %2 = vector.load %arg8[%c0_2, %c0_3] : memref<152x16xf32, #tpu.memory_space<vmem>>, vector<128x16xf32>
    tpu.vector_store %arg8[%c0_2, %c0_3], %1 {strides = array<i32>} : memref<152x16xf32, #tpu.memory_space<vmem>>, vector<128x16xf32>,
    %c0_4 = arith.constant 0 : index
    %c0_5 = arith.constant 0 : index
    %c0_6 = arith.constant 0 : index
    %3 = vector.load %arg4[%c0_4, %c0_5, %c0_6] : memref<1x16x16xf32, #tpu.memory_space<vmem>>, vector<1x16x16xf32>
    %4 = vector.shape_cast %3 : vector<1x16x16xf32> to vector<16x16xf32>
    %c128 = arith.constant 128 : index
    %c0_7 = arith.constant 0 : index
    %5 = vector.load %arg8[%c128, %c0_7] : memref<152x16xf32, #tpu.memory_space<vmem>>, vector<16x16xf32>
    tpu.vector_store %arg8[%c128, %c0_7], %4 {strides = array<i32>} : memref<152x16xf32, #tpu.memory_space<vmem>>, vector<16x16xf32>,
    %cst = arith.constant 0.000000e+00 : f32
    %6 = vector.broadcast %cst : f32 to vector<8x16xf32>
    %c144 = arith.constant 144 : index
    %c0_8 = arith.constant 0 : index
    %7 = vector.load %arg8[%c144, %c0_8] : memref<152x16xf32, #tpu.memory_space<vmem>>, vector<8x16xf32>
    tpu.vector_store %arg8[%c144, %c0_8], %6 {strides = array<i32>} : memref<152x16xf32, #tpu.memory_space<vmem>>, vector<8x16xf32>,
    %c0_9 = arith.constant 0 : index
    %c0_10 = arith.constant 0 : index
    %8 = vector.load %arg8[%c0_9, %c0_10] : memref<152x16xf32, #tpu.memory_space<vmem>>, vector<128x16xf32>
    %c0_11 = arith.constant 0 : index
    %c0_12 = arith.constant 0 : index
    %c0_13 = arith.constant 0 : index
    %9 = vector.load %arg5[%c0_11, %c0_12, %c0_13] : memref<4x16x128xf32, #tpu.memory_space<vmem>>, vector<1x16x128xf32>
    %10 = vector.shape_cast %9 : vector<1x16x128xf32> to vector<16x128xf32>
    %cst_14 = arith.constant dense<0.000000e+00> : vector<128x128xf32>
    %11 = tpu.matmul %8, %10, %cst_14 {dimension_numbers = #tpu.dot_dimension_numbers<[1], [0], [0], [1], [0, 0, 1, 1], [], []>} : vector<128x16xf32>, vector<16x128xf32>, vector<128x128xf32> -> vector<128x128xf32>
    %c1 = arith.constant 1 : index
    %c0_15 = arith.constant 0 : index
    %12 = vector.load %arg8[%c1, %c0_15] : memref<152x16xf32, #tpu.memory_space<vmem>>, vector<128x16xf32>
    %c1_16 = arith.constant 1 : index
    %c0_17 = arith.constant 0 : index
    %c0_18 = arith.constant 0 : index
    %13 = vector.load %arg5[%c1_16, %c0_17, %c0_18] : memref<4x16x128xf32, #tpu.memory_space<vmem>>, vector<1x16x128xf32>
    %14 = vector.shape_cast %13 : vector<1x16x128xf32> to vector<16x128xf32>
    %cst_19 = arith.constant dense<0.000000e+00> : vector<128x128xf32>
    %15 = tpu.matmul %12, %14, %cst_19 {dimension_numbers = #tpu.dot_dimension_numbers<[1], [0], [0], [1], [0, 0, 1, 1], [], []>} : vector<128x16xf32>, vector<16x128xf32>, vector<128x128xf32> -> vector<128x128xf32>
    %16 = arith.addf %11, %15 : vector<128x128xf32>
    %c16 = arith.constant 16 : index
    %c0_20 = arith.constant 0 : index
    %17 = vector.load %arg8[%c16, %c0_20] : memref<152x16xf32, #tpu.memory_space<vmem>>, vector<128x16xf32>
    %c2 = arith.constant 2 : index
    %c0_21 = arith.constant 0 : index
    %c0_22 = arith.constant 0 : index
    %18 = vector.load %arg5[%c2, %c0_21, %c0_22] : memref<4x16x128xf32, #tpu.memory_space<vmem>>, vector<1x16x128xf32>
    %19 = vector.shape_cast %18 : vector<1x16x128xf32> to vector<16x128xf32>
    %cst_23 = arith.constant dense<0.000000e+00> : vector<128x128xf32>
    %20 = tpu.matmul %17, %19, %cst_23 {dimension_numbers = #tpu.dot_dimension_numbers<[1], [0], [0], [1], [0, 0, 1, 1], [], []>} : vector<128x16xf32>, vector<16x128xf32>, vector<128x128xf32> -> vector<128x128xf32>
    %21 = arith.addf %16, %20 : vector<128x128xf32>
    %c17 = arith.constant 17 : index
    %c0_24 = arith.constant 0 : index
    %22 = vector.load %arg8[%c17, %c0_24] : memref<152x16xf32, #tpu.memory_space<vmem>>, vector<128x16xf32>
    %c3 = arith.constant 3 : index
    %c0_25 = arith.constant 0 : index
    %c0_26 = arith.constant 0 : index
    %23 = vector.load %arg5[%c3, %c0_25, %c0_26] : memref<4x16x128xf32, #tpu.memory_space<vmem>>, vector<1x16x128xf32>
    %24 = vector.shape_cast %23 : vector<1x16x128xf32> to vector<16x128xf32>
    %cst_27 = arith.constant dense<0.000000e+00> : vector<128x128xf32>
    %25 = tpu.matmul %22, %24, %cst_27 {dimension_numbers = #tpu.dot_dimension_numbers<[1], [0], [0], [1], [0, 0, 1, 1], [], []>} : vector<128x16xf32>, vector<16x128xf32>, vector<128x128xf32> -> vector<128x128xf32>
    %26 = arith.addf %21, %25 : vector<128x128xf32>
    %c0_28 = arith.constant 0 : index
    %c0_29 = arith.constant 0 : index
    %27 = vector.load %arg6[%c0_28, %c0_29] : memref<1x128xf32, #tpu.memory_space<vmem>>, vector<1x128xf32>
    %28 = vector.broadcast %27 : vector<1x128xf32> to vector<128x128xf32>
    %29 = arith.addf %26, %28 : vector<128x128xf32>
    %c0_30 = arith.constant 0 : index
    %c0_31 = arith.constant 0 : index
    %c0_32 = arith.constant 0 : index
    %30 = vector.load %arg7[%c0_30, %c0_31, %c0_32] : memref<1x128x128xf32, #tpu.memory_space<vmem>>, vector<1x128x128xf32>
    %31 = vector.shape_cast %30 : vector<1x128x128xf32> to vector<128x128xf32>
    %32 = vector.shape_cast %29 : vector<128x128xf32> to vector<1x128x128xf32>
    tpu.vector_store %arg7[%c0_30, %c0_31, %c0_32], %32 {strides = array<i32>} : memref<1x128x128xf32, #tpu.memory_space<vmem>>, vector<1x128x128xf32>,
    return
  }
  func.func @transform_0(%arg0: i32, %arg1: i32, %arg2: i32) -> (i32, i32, i32) {
    %c0_i32 = arith.constant 0 : i32
    %c0_i32_0 = arith.constant 0 : i32
    return %arg1, %arg2, %c0_i32 : i32, i32, i32
  }
  func.func @transform_1(%arg0: i32, %arg1: i32, %arg2: i32) -> (i32, i32, i32) {
    %c1_i32 = arith.constant 1 : i32
    %0 = arith.addi %arg2, %c1_i32 : i32
    %c8_i32 = arith.constant 8 : i32
    %1 = arith.muli %0, %c8_i32 : i32
    %c0_i32 = arith.constant 0 : i32
    %c0_i32_0 = arith.constant 0 : i32
    return %arg1, %1, %c0_i32 : i32, i32, i32
  }
  func.func @transform_2(%arg0: i32, %arg1: i32, %arg2: i32) -> (i32, i32, i32) {
    %c0_i32 = arith.constant 0 : i32
    %c0_i32_0 = arith.constant 0 : i32
    %c0_i32_1 = arith.constant 0 : i32
    return %c0_i32, %c0_i32_0, %arg0 : i32, i32, i32
  }
  func.func @transform_3(%arg0: i32, %arg1: i32, %arg2: i32) -> (i32, i32) {
    %c0_i32 = arith.constant 0 : i32
    %c0_i32_0 = arith.constant 0 : i32
    return %c0_i32, %arg0 : i32, i32
  }
  func.func @transform_4(%arg0: i32, %arg1: i32, %arg2: i32) -> (i32, i32, i32) {
    %c0_i32 = arith.constant 0 : i32
    return %arg1, %arg2, %arg0 : i32, i32, i32
  }
}

</mosaic_0001>

<bundles_post_ra>
// kernel: downsample_forward.1
= control target key start
LH: loop header
LB: loop body
LE: loop exit
PB: predicated region body
PF: predicated region fallthrough
CT: control target
= control target key end

     0   :  { %s1296_s15 = smov 0   ;;  %s1298_s16 = smov 0   ;;  %s1504_s0 = inlined_call_operand.vmem [shape: f32[2,144,16], index: 0, kind: input, shape index: {}, may-alias: {0,1}]   ;;  %s1505_s1 = inlined_call_operand.vmem [shape: f32[2,144,16], index: 1, kind: input, shape index: {}, may-alias: {0,1}]   ;;  %s1506_s2 = inlined_call_operand.vmem [shape: f32[4,16,128], index: 2, kind: input, shape index: {}]   ;;  %s1507_s3 = inlined_call_operand.vmem [shape: f32[1,128], index: 3, kind: input, shape index: {}]   ;;  %s1508_s4 = inlined_call_operand.vmem [shape: f32[2,128,128], index: 4, kind: output, shape index: {}]  }
   0x1   :  { %s1300_s17 = smov 0  }
   0x2 LB: > { %s29_s18 = sadd.s32 1, %s1264_s16  ;;  %p1137_p0 = scmp.ge.s32.totalorder %s1268_s17, 1  ;;  %s1268_s17 = sphi %s1300_s17, %s14_s17   ;;  %s1264_s16 = sphi %s1298_s16, %s1510_s16   ;;  %s1260_s15 = sphi %s1296_s15, %s1509_s15  }
   0x3   : > { %p31_p1 = scmp.ge.s32.totalorder %s29_s18, 2  ;;  %p242_p2 = scmp.lt.s32.totalorder %s1268_s17, 3 }
   0x5   : > { %s1512_s18 = smov (%p31_p1, %s29_s18), 0  ;;  %p243_p3 = pnand %p1137_p0, %p242_p2 }
   0x6   : > { %p306_p4 = scmp.lt.s32.totalorder (!%p243_p3), %s1260_s15, 1 }
   0x7   : > { %246 = sbr.rel (%p243_p3) target bundleno = 284 (0x11c), region = 36 }
   0xc   : > { %v1177_v0 = vld [vmem:[%s1506_s2 + $0x28] sm:$0xff]  ;;  %v1176_v1 = vld [vmem:[%s1506_s2 + $0x20] sm:$0xff]  ;;  %v1195_v2 = vld [vmem:[%s1506_s2 + $0x38] sm:$0xff]  ;;  %s1514_s15 = smov (!%p306_p4, %s1260_s15), 1  ;;  %vm369_vm0 = vcmask 130048   ;;  %v1270_v52 = vmov 0.0  }
   0xd   : > { %735 = vmatpush.msra.mxu2 %v1177_v0  ;;  %883 = vmatpush.msra.mxu3 %v1195_v2  ;;  %v1143_v3 = vld [vmem:[%s1506_s2 + $0x18] sm:$0xff]  ;;  %v408_v4 = vld [vmem:[%s1506_s2 + $0x8] sm:$0xff]  ;;  %v1194_v5 = vld [vmem:[%s1506_s2 + $0x30] sm:$0xff]  ;;  %s1217_s9 = smul.u32 144, %s1514_s15  ;;  %390 = vst.msk [vmem:[#allocation2 + $0x90] sm:$0xff] %vm369_vm0, %v1270_v52  ;;  %s1216_s21 = sshll.u32 %s1514_s15, 7 }
   0xe   : > { %490 = vmatpush.msra.mxu0 %v1143_v3  ;;  %603 = vmatpush.msra.mxu1 %v408_v4  ;;  %v1142_v6 = vld [vmem:[%s1506_s2 + $0x10] sm:$0xff]  ;;  %v407_v7 = vld [vmem:[%s1506_s2] sm:$0xff]  ;;  %s1461_s26 = scalar_lea.vmem %s1508_s4, %s1216_s21 }
   0xf   : > { %736 = vmatpush.msra.mxu2 %v1176_v1  ;;  %884 = vmatpush.msra.mxu3 %v1194_v5  ;;  %s1346_s12 = scalar_lea.vmem %s1504_s0, %s1217_s9  ;;  %s1215_s13 = sadd.s32 128, %s1217_s9  ;;  %v1456_v5 = vld [vmem:[%s1507_s3] ss:$0 sm:$0xff] }
  0x10   : > { %491 = vmatpush.msra.mxu0 %v1142_v6  ;;  %604 = vmatpush.msra.mxu1 %v407_v7  ;;  %v355_v8 = vld [vmem:[%s1346_s12 + $0x10] sm:$0xff]  ;;  %v356_v9 = vld [vmem:[%s1346_s12 + $0x18] sm:$0xff]  ;;  %v353_v10 = vld [vmem:[%s1346_s12] sm:$0xff]  ;;  %s329_s20 = scalar_lea.vmem %s1505_s1, %s1215_s13 }
  0x11   : > { %372 = vst.msk [vmem:[#allocation2 + $0x10] sm:$0xff] %vm369_vm0, %v355_v8  ;;  %v354_v11 = vld [vmem:[%s1346_s12 + $0x8] sm:$0xff]  ;;  %v357_v12 = vld [vmem:[%s1346_s12 + $0x20] sm:$0xff]  ;;  %v359_v14 = vld [vmem:[%s1346_s12 + $0x30] sm:$0xff] }
  0x12   : > { %373 = vst.msk [vmem:[#allocation2 + $0x18] sm:$0xff] %vm369_vm0, %v356_v9  ;;  %v358_v13 = vld [vmem:[%s1346_s12 + $0x28] sm:$0xff]  ;;  %v360_v15 = vld [vmem:[%s1346_s12 + $0x38] sm:$0xff]  ;;  %v361_v19 = vld [vmem:[%s1346_s12 + $0x40] sm:$0xff] }
  0x13   : > { %370 = vst.msk [vmem:[#allocation2] sm:$0xff] %vm369_vm0, %v353_v10  ;;  %v362_v25 = vld [vmem:[%s1346_s12 + $0x48] sm:$0xff]  ;;  %v363_v28 = vld [vmem:[%s1346_s12 + $0x50] sm:$0xff]  ;;  %v364_v31 = vld [vmem:[%s1346_s12 + $0x58] sm:$0xff] }
  0x14   : > { %371 = vst.msk [vmem:[#allocation2 + $0x8] sm:$0xff] %vm369_vm0, %v354_v11  ;;  %v365_v34 = vld [vmem:[%s1346_s12 + $0x60] sm:$0xff]  ;;  %v366_v37 = vld [vmem:[%s1346_s12 + $0x68] sm:$0xff]  ;;  %v367_v40 = vld [vmem:[%s1346_s12 + $0x70] sm:$0xff] }
  0x15   : > { %374 = vst.msk [vmem:[#allocation2 + $0x20] sm:$0xff] %vm369_vm0, %v357_v12  ;;  %v368_v43 = vld [vmem:[%s1346_s12 + $0x78] sm:$0xff]  ;;  %v386_v46 = vld [vmem:[%s329_s20] sm:$0xff]  ;;  %v387_v49 = vld [vmem:[%s329_s20 + $0x8] sm:$0xff] }
  0x16   : > { %375 = vst.msk [vmem:[#allocation2 + $0x28] sm:$0xff] %vm369_vm0, %v358_v13 }
  0x17   : > { %376 = vst.msk [vmem:[#allocation2 + $0x30] sm:$0xff] %vm369_vm0, %v359_v14 }
  0x18   : > { %v654_v16 = vld [vmem:[#allocation2 + $0x10] sm:$0xff]  ;;  %377 = vst.msk [vmem:[#allocation2 + $0x38] sm:$0xff] %vm369_vm0, %v360_v15 }
  0x19   : > { %1178 = vmatmul.msk.f32.vlgmr.msra.gmra.mxu2 %vm369_vm0, %v654_v16  ;;  %v802_v17 = vld [vmem:[#allocation2 + $0x11] sm:$0xff]  ;;  %378 = vst.msk [vmem:[#allocation2 + $0x40] sm:$0xff] %vm369_vm0, %v361_v19 }
  0x1a   : > { %1196 = vmatmul.msk.f32.vlgmr.msra.gmra.mxu3 %vm369_vm0, %v802_v17  ;;  %v391_v18 = vld [vmem:[#allocation2] sm:$0xff]  ;;  %v655_v21 = vld [vmem:[#allocation2 + $0x18] sm:$0xff]  ;;  %379 = vst.msk [vmem:[#allocation2 + $0x48] sm:$0xff] %vm369_vm0, %v362_v25 }
  0x1b   : > { %v409_v20 = vld [vmem:[#allocation2 + $0x1] sm:$0xff]  ;;  %1160 = vmatmul.msk.f32.vlgmr.msra.gmra.mxu1 %vm369_vm0, %v391_v18  ;;  %v410_v24 = vld [vmem:[#allocation2 + $0x9] sm:$0xff]  ;;  %380 = vst.msk [vmem:[#allocation2 + $0x50] sm:$0xff] %vm369_vm0, %v363_v28 }
  0x1c   : > { %1144 = vmatmul.msk.f32.vlgmr.msra.gmra.mxu0 %vm369_vm0, %v409_v20  ;;  %v803_v22 = vld [vmem:[#allocation2 + $0x19] sm:$0xff]  ;;  %v392_v23 = vld [vmem:[#allocation2 + $0x8] sm:$0xff]  ;;  %381 = vst.msk [vmem:[#allocation2 + $0x58] sm:$0xff] %vm369_vm0, %v364_v31 }
  0x1d   : > { %v656_v26 = vld [vmem:[#allocation2 + $0x20] sm:$0xff]  ;;  %v657_v29 = vld [vmem:[#allocation2 + $0x28] sm:$0xff]  ;;  %382 = vst.msk [vmem:[#allocation2 + $0x60] sm:$0xff] %vm369_vm0, %v365_v34 }
  0x1e   : > { %v804_v27 = vld [vmem:[#allocation2 + $0x21] sm:$0xff]  ;;  %v805_v30 = vld [vmem:[#allocation2 + $0x29] sm:$0xff]  ;;  %383 = vst.msk [vmem:[#allocation2 + $0x68] sm:$0xff] %vm369_vm0, %v366_v37 }
  0x1f   : > { %v658_v32 = vld [vmem:[#allocation2 + $0x30] sm:$0xff]  ;;  %v659_v35 = vld [vmem:[#allocation2 + $0x38] sm:$0xff]  ;;  %384 = vst.msk [vmem:[#allocation2 + $0x70] sm:$0xff] %vm369_vm0, %v367_v40 }
  0x20   : > { %v806_v33 = vld [vmem:[#allocation2 + $0x31] sm:$0xff]  ;;  %v807_v36 = vld [vmem:[#allocation2 + $0x39] sm:$0xff]  ;;  %385 = vst.msk [vmem:[#allocation2 + $0x78] sm:$0xff] %vm369_vm0, %v368_v43 }
  0x21   : > { %1179 = vmatmul.msk.f32.gmra.mxu2 %vm369_vm0, %v655_v21  ;;  %v660_v38 = vld [vmem:[#allocation2 + $0x40] sm:$0xff]  ;;  %v661_v41 = vld [vmem:[#allocation2 + $0x48] sm:$0xff]  ;;  %388 = vst.msk [vmem:[#allocation2 + $0x80] sm:$0xff] %vm369_vm0, %v386_v46 }
  0x22   : > { %1197 = vmatmul.msk.f32.gmra.mxu3 %vm369_vm0, %v803_v22  ;;  %v808_v39 = vld [vmem:[#allocation2 + $0x41] sm:$0xff]  ;;  %v809_v42 = vld [vmem:[#allocation2 + $0x49] sm:$0xff]  ;;  %389 = vst.msk [vmem:[#allocation2 + $0x88] sm:$0xff] %vm369_vm0, %v387_v49 }
  0x23   : > { %1161 = vmatmul.msk.f32.gmra.mxu1 %vm369_vm0, %v392_v23  ;;  %v662_v44 = vld [vmem:[#allocation2 + $0x50] sm:$0xff]  ;;  %v663_v47 = vld [vmem:[#allocation2 + $0x58] sm:$0xff] }
  0x24   : > { %1145 = vmatmul.msk.f32.gmra.mxu0 %vm369_vm0, %v410_v24  ;;  %v810_v45 = vld [vmem:[#allocation2 + $0x51] sm:$0xff]  ;;  %v811_v48 = vld [vmem:[#allocation2 + $0x59] sm:$0xff] }
  0x25   : > { %v664_v50 = vld [vmem:[#allocation2 + $0x60] sm:$0xff]  ;;  %v665_v53 = vld [vmem:[#allocation2 + $0x68] sm:$0xff] }
  0x26   : > { %v812_v51 = vld [vmem:[#allocation2 + $0x61] sm:$0xff]  ;;  %v813_v54 = vld [vmem:[#allocation2 + $0x69] sm:$0xff] }
  0x27   : > { %v666_v55 = vld [vmem:[#allocation2 + $0x70] sm:$0xff]  ;;  %v667_v57 = vld [vmem:[#allocation2 + $0x78] sm:$0xff] }
  0x28   : > { %v814_v56 = vld [vmem:[#allocation2 + $0x71] sm:$0xff]  ;;  %v815_v58 = vld [vmem:[#allocation2 + $0x79] sm:$0xff] }
  0x29   : > { %1180 = vmatmul.msk.f32.gmra.mxu2 %vm369_vm0, %v656_v26  ;;  %v668_v59 = vld [vmem:[#allocation2 + $0x80] sm:$0xff]  ;;  %v669_v61 = vld [vmem:[#allocation2 + $0x88] sm:$0xff] }
  0x2a   : > { %1198 = vmatmul.msk.f32.gmra.mxu3 %vm369_vm0, %v804_v27  ;;  %v816_v60 = vld [vmem:[#allocation2 + $0x81] sm:$0xff]  ;;  %v817_v62 = vld [vmem:[#allocation2 + $0x89] sm:$0xff] }
  0x2b   : > { %1162 = vmatmul.msk.f32.gmra.mxu1 %vm369_vm0, %v654_v16 }
  0x2c   : > { %1146 = vmatmul.msk.f32.gmra.mxu0 %vm369_vm0, %v802_v17 }
  0x31   : > { %1181 = vmatmul.msk.f32.gmra.mxu2 %vm369_vm0, %v657_v29 }
  0x32   : > { %1199 = vmatmul.msk.f32.gmra.mxu3 %vm369_vm0, %v805_v30 }
  0x33   : > { %1163 = vmatmul.msk.f32.gmra.mxu1 %vm369_vm0, %v655_v21 }
  0x34   : > { %1147 = vmatmul.msk.f32.gmra.mxu0 %vm369_vm0, %v803_v22 }
  0x39   : > { %1182 = vmatmul.msk.f32.gmra.mxu2 %vm369_vm0, %v658_v32 }
  0x3a   : > { %1200 = vmatmul.msk.f32.gmra.mxu3 %vm369_vm0, %v806_v33 }
  0x3b   : > { %1164 = vmatmul.msk.f32.gmra.mxu1 %vm369_vm0, %v656_v26 }
  0x3c   : > { %1148 = vmatmul.msk.f32.gmra.mxu0 %vm369_vm0, %v804_v27 }
  0x41   : > { %1183 = vmatmul.msk.f32.gmra.mxu2 %vm369_vm0, %v659_v35 }
  0x42   : > { %1201 = vmatmul.msk.f32.gmra.mxu3 %vm369_vm0, %v807_v36 }
  0x43   : > { %1165 = vmatmul.msk.f32.gmra.mxu1 %vm369_vm0, %v657_v29 }
  0x44   : > { %1149 = vmatmul.msk.f32.gmra.mxu0 %vm369_vm0, %v805_v30 }
  0x49   : > { %1184 = vmatmul.msk.f32.gmra.mxu2 %vm369_vm0, %v660_v38 }
  0x4a   : > { %1202 = vmatmul.msk.f32.gmra.mxu3 %vm369_vm0, %v808_v39 }
  0x4b   : > { %1166 = vmatmul.msk.f32.gmra.mxu1 %vm369_vm0, %v658_v32 }
  0x4c   : > { %1150 = vmatmul.msk.f32.gmra.mxu0 %vm369_vm0, %v806_v33 }
  0x51   : > { %1185 = vmatmul.msk.f32.gmra.mxu2 %vm369_vm0, %v661_v41 }
  0x52   : > { %1203 = vmatmul.msk.f32.gmra.mxu3 %vm369_vm0, %v809_v42 }
  0x53   : > { %1167 = vmatmul.msk.f32.gmra.mxu1 %vm369_vm0, %v659_v35 }
  0x54   : > { %1151 = vmatmul.msk.f32.gmra.mxu0 %vm369_vm0, %v807_v36 }
  0x59   : > { %1186 = vmatmul.msk.f32.gmra.mxu2 %vm369_vm0, %v662_v44 }
  0x5a   : > { %1204 = vmatmul.msk.f32.gmra.mxu3 %vm369_vm0, %v810_v45 }
  0x5b   : > { %1168 = vmatmul.msk.f32.gmra.mxu1 %vm369_vm0, %v660_v38 }
  0x5c   : > { %1152 = vmatmul.msk.f32.gmra.mxu0 %vm369_vm0, %v808_v39 }
  0x61   : > { %1187 = vmatmul.msk.f32.gmra.mxu2 %vm369_vm0, %v663_v47 }
  0x62   : > { %1205 = vmatmul.msk.f32.gmra.mxu3 %vm369_vm0, %v811_v48 }
  0x63   : > { %1169 = vmatmul.msk.f32.gmra.mxu1 %vm369_vm0, %v661_v41 }
  0x64   : > { %1153 = vmatmul.msk.f32.gmra.mxu0 %vm369_vm0, %v809_v42 }
  0x69   : > { %1188 = vmatmul.msk.f32.gmra.mxu2 %vm369_vm0, %v664_v50 }
  0x6a   : > { %1206 = vmatmul.msk.f32.gmra.mxu3 %vm369_vm0, %v812_v51 }
  0x6b   : > { %1170 = vmatmul.msk.f32.gmra.mxu1 %vm369_vm0, %v662_v44 }
  0x6c   : > { %1154 = vmatmul.msk.f32.gmra.mxu0 %vm369_vm0, %v810_v45 }
  0x71   : > { %1189 = vmatmul.msk.f32.gmra.mxu2 %vm369_vm0, %v665_v53 }
  0x72   : > { %1207 = vmatmul.msk.f32.gmra.mxu3 %vm369_vm0, %v813_v54 }
  0x73   : > { %1171 = vmatmul.msk.f32.gmra.mxu1 %vm369_vm0, %v663_v47 }
  0x74   : > { %1155 = vmatmul.msk.f32.gmra.mxu0 %vm369_vm0, %v811_v48 }
  0x79   : > { %1190 = vmatmul.msk.f32.gmra.mxu2 %vm369_vm0, %v666_v55 }
  0x7a   : > { %1208 = vmatmul.msk.f32.gmra.mxu3 %vm369_vm0, %v814_v56 }
  0x7b   : > { %1172 = vmatmul.msk.f32.gmra.mxu1 %vm369_vm0, %v664_v50 }
  0x7c   : > { %1156 = vmatmul.msk.f32.gmra.mxu0 %vm369_vm0, %v812_v51 }
  0x81   : > { %1191 = vmatmul.msk.f32.gmra.mxu2 %vm369_vm0, %v667_v57 }
  0x82   : > { %1209 = vmatmul.msk.f32.gmra.mxu3 %vm369_vm0, %v815_v58 }
  0x83   : > { %1173 = vmatmul.msk.f32.gmra.mxu1 %vm369_vm0, %v665_v53 }
  0x84   : > { %1157 = vmatmul.msk.f32.gmra.mxu0 %vm369_vm0, %v813_v54 }
  0x89   : > { %1192 = vmatmul.msk.f32.gmra.mxu2 %vm369_vm0, %v668_v59 }
  0x8a   : > { %1210 = vmatmul.msk.f32.gmra.mxu3 %vm369_vm0, %v816_v60 }
  0x8b   : > { %1174 = vmatmul.msk.f32.gmra.mxu1 %vm369_vm0, %v666_v55 }
  0x8c   : > { %1158 = vmatmul.msk.f32.gmra.mxu0 %vm369_vm0, %v814_v56 }
  0x91   : > { %1193 = vmatmul.msk.f32.gmra.mxu2 %vm369_vm0, %v669_v61 }
  0x92   : > { %1211 = vmatmul.msk.f32.gmra.mxu3 %vm369_vm0, %v817_v62 }
  0x93   : > { %1175 = vmatmul.msk.f32.gmra.mxu1 %vm369_vm0, %v667_v57 }
  0x94   : > { %1159 = vmatmul.msk.f32.gmra.mxu0 %vm369_vm0, %v815_v58 }
  0x98   : > { %v606_v63 = vpop.f32.mrf.mxu1 }
  0x99   : > { %v493_v0 = vpop.f32.mrf.mxu0 }
  0x9a   : > { %v607_v1 = vadd.f32 %v606_v63, %v493_v0 }
  0x9c   : > { %v738_v2 = vpop.f32.mrf.mxu2 }
  0x9d   : > { %v786_v3 = vadd.f32 %v738_v2, %v607_v1  ;;  %v886_v4 = vpop.f32.mrf.mxu3 }
  0x9f   : > { %v934_v6 = vadd.f32 %v886_v4, %v786_v3 }
  0xa0   : > { %v609_v7 = vpop.f32.mrf.mxu1 }
  0xa1   : > { %v954_v8 = vadd.f32 %v1456_v5, %v934_v6  ;;  %v496_v9 = vpop.f32.mrf.mxu0 }
  0xa2   : > { %v610_v10 = vadd.f32 %v609_v7, %v496_v9 }
  0xa3   : > { %970 = vst [vmem:[%s1461_s26] sm:$0xff] %v954_v8 }
  0xa4   : > { %v741_v11 = vpop.f32.mrf.mxu2 }
  0xa5   : > { %v787_v12 = vadd.f32 %v741_v11, %v610_v10  ;;  %v889_v13 = vpop.f32.mrf.mxu3 }
  0xa7   : > { %v935_v14 = vadd.f32 %v889_v13, %v787_v12 }
  0xa8   : > { %v612_v15 = vpop.f32.mrf.mxu1 }
  0xa9   : > { %v955_v16 = vadd.f32 %v1456_v5, %v935_v14  ;;  %v499_v17 = vpop.f32.mrf.mxu0 }
  0xaa   : > { %v613_v18 = vadd.f32 %v612_v15, %v499_v17 }
  0xab   : > { %971 = vst [vmem:[%s1461_s26 + $0x8] sm:$0xff] %v955_v16 }
  0xac   : > { %v744_v19 = vpop.f32.mrf.mxu2 }
  0xad   : > { %v788_v20 = vadd.f32 %v744_v19, %v613_v18  ;;  %v892_v21 = vpop.f32.mrf.mxu3 }
  0xaf   : > { %v936_v22 = vadd.f32 %v892_v21, %v788_v20 }
  0xb0   : > { %v615_v23 = vpop.f32.mrf.mxu1 }
  0xb1   : > { %v956_v24 = vadd.f32 %v1456_v5, %v936_v22  ;;  %v502_v25 = vpop.f32.mrf.mxu0 }
  0xb2   : > { %v616_v26 = vadd.f32 %v615_v23, %v502_v25 }
  0xb3   : > { %972 = vst [vmem:[%s1461_s26 + $0x10] sm:$0xff] %v956_v24 }
  0xb4   : > { %v747_v27 = vpop.f32.mrf.mxu2 }
  0xb5   : > { %v789_v28 = vadd.f32 %v747_v27, %v616_v26  ;;  %v895_v29 = vpop.f32.mrf.mxu3 }
  0xb7   : > { %v937_v30 = vadd.f32 %v895_v29, %v789_v28 }
  0xb8   : > { %v618_v31 = vpop.f32.mrf.mxu1 }
  0xb9   : > { %v957_v32 = vadd.f32 %v1456_v5, %v937_v30  ;;  %v505_v33 = vpop.f32.mrf.mxu0 }
  0xba   : > { %v619_v34 = vadd.f32 %v618_v31, %v505_v33 }
  0xbb   : > { %973 = vst [vmem:[%s1461_s26 + $0x18] sm:$0xff] %v957_v32 }
  0xbc   : > { %v750_v35 = vpop.f32.mrf.mxu2 }
  0xbd   : > { %v790_v36 = vadd.f32 %v750_v35, %v619_v34  ;;  %v898_v37 = vpop.f32.mrf.mxu3 }
  0xbf   : > { %v938_v38 = vadd.f32 %v898_v37, %v790_v36 }
  0xc0   : > { %v621_v39 = vpop.f32.mrf.mxu1 }
  0xc1   : > { %v958_v40 = vadd.f32 %v1456_v5, %v938_v38  ;;  %v508_v41 = vpop.f32.mrf.mxu0 }
  0xc2   : > { %v622_v42 = vadd.f32 %v621_v39, %v508_v41 }
  0xc3   : > { %974 = vst [vmem:[%s1461_s26 + $0x20] sm:$0xff] %v958_v40 }
  0xc4   : > { %v753_v43 = vpop.f32.mrf.mxu2 }
  0xc5   : > { %v791_v44 = vadd.f32 %v753_v43, %v622_v42  ;;  %v901_v45 = vpop.f32.mrf.mxu3 }
  0xc7   : > { %v939_v46 = vadd.f32 %v901_v45, %v791_v44 }
  0xc8   : > { %v624_v47 = vpop.f32.mrf.mxu1 }
  0xc9   : > { %v959_v48 = vadd.f32 %v1456_v5, %v939_v46  ;;  %v511_v49 = vpop.f32.mrf.mxu0 }
  0xca   : > { %v625_v50 = vadd.f32 %v624_v47, %v511_v49 }
  0xcb   : > { %975 = vst [vmem:[%s1461_s26 + $0x28] sm:$0xff] %v959_v48 }
  0xcc   : > { %v756_v51 = vpop.f32.mrf.mxu2 }
  0xcd   : > { %v792_v52 = vadd.f32 %v756_v51, %v625_v50  ;;  %v904_v53 = vpop.f32.mrf.mxu3 }
  0xcf   : > { %v940_v54 = vadd.f32 %v904_v53, %v792_v52 }
  0xd0   : > { %v627_v55 = vpop.f32.mrf.mxu1 }
  0xd1   : > { %v960_v56 = vadd.f32 %v1456_v5, %v940_v54  ;;  %v514_v57 = vpop.f32.mrf.mxu0 }
  0xd2   : > { %v628_v58 = vadd.f32 %v627_v55, %v514_v57 }
  0xd3   : > { %976 = vst [vmem:[%s1461_s26 + $0x30] sm:$0xff] %v960_v56 }
  0xd4   : > { %v759_v59 = vpop.f32.mrf.mxu2 }
  0xd5   : > { %v793_v60 = vadd.f32 %v759_v59, %v628_v58  ;;  %v907_v61 = vpop.f32.mrf.mxu3 }
  0xd7   : > { %v941_v62 = vadd.f32 %v907_v61, %v793_v60 }
  0xd8   : > { %v630_v63 = vpop.f32.mrf.mxu1 }
  0xd9   : > { %v961_v0 = vadd.f32 %v1456_v5, %v941_v62  ;;  %v517_v1 = vpop.f32.mrf.mxu0 }
  0xda   : > { %v631_v2 = vadd.f32 %v630_v63, %v517_v1 }
  0xdb   : > { %977 = vst [vmem:[%s1461_s26 + $0x38] sm:$0xff] %v961_v0 }
  0xdc   : > { %v762_v3 = vpop.f32.mrf.mxu2 }
  0xdd   : > { %v794_v4 = vadd.f32 %v762_v3, %v631_v2  ;;  %v910_v6 = vpop.f32.mrf.mxu3 }
  0xdf   : > { %v942_v7 = vadd.f32 %v910_v6, %v794_v4 }
  0xe0   : > { %v633_v8 = vpop.f32.mrf.mxu1 }
  0xe1   : > { %v962_v9 = vadd.f32 %v1456_v5, %v942_v7  ;;  %v520_v10 = vpop.f32.mrf.mxu0 }
  0xe2   : > { %v634_v11 = vadd.f32 %v633_v8, %v520_v10 }
  0xe3   : > { %978 = vst [vmem:[%s1461_s26 + $0x40] sm:$0xff] %v962_v9 }
  0xe4   : > { %v765_v12 = vpop.f32.mrf.mxu2 }
  0xe5   : > { %v795_v13 = vadd.f32 %v765_v12, %v634_v11  ;;  %v913_v14 = vpop.f32.mrf.mxu3 }
  0xe7   : > { %v943_v15 = vadd.f32 %v913_v14, %v795_v13 }
  0xe8   : > { %v636_v16 = vpop.f32.mrf.mxu1 }
  0xe9   : > { %v963_v17 = vadd.f32 %v1456_v5, %v943_v15  ;;  %v523_v18 = vpop.f32.mrf.mxu0 }
  0xea   : > { %v637_v19 = vadd.f32 %v636_v16, %v523_v18 }
  0xeb   : > { %979 = vst [vmem:[%s1461_s26 + $0x48] sm:$0xff] %v963_v17 }
  0xec   : > { %v768_v20 = vpop.f32.mrf.mxu2 }
  0xed   : > { %v796_v21 = vadd.f32 %v768_v20, %v637_v19  ;;  %v916_v22 = vpop.f32.mrf.mxu3 }
  0xef   : > { %v944_v23 = vadd.f32 %v916_v22, %v796_v21 }
  0xf0   : > { %v639_v24 = vpop.f32.mrf.mxu1 }
  0xf1   : > { %v964_v25 = vadd.f32 %v1456_v5, %v944_v23  ;;  %v526_v26 = vpop.f32.mrf.mxu0 }
  0xf2   : > { %v640_v27 = vadd.f32 %v639_v24, %v526_v26 }
  0xf3   : > { %980 = vst [vmem:[%s1461_s26 + $0x50] sm:$0xff] %v964_v25 }
  0xf4   : > { %v771_v28 = vpop.f32.mrf.mxu2 }
  0xf5   : > { %v797_v29 = vadd.f32 %v771_v28, %v640_v27  ;;  %v919_v30 = vpop.f32.mrf.mxu3 }
  0xf7   : > { %v945_v31 = vadd.f32 %v919_v30, %v797_v29 }
  0xf8   : > { %v642_v32 = vpop.f32.mrf.mxu1 }
  0xf9   : > { %v965_v33 = vadd.f32 %v1456_v5, %v945_v31  ;;  %v529_v34 = vpop.f32.mrf.mxu0 }
  0xfa   : > { %v643_v35 = vadd.f32 %v642_v32, %v529_v34 }
  0xfb   : > { %981 = vst [vmem:[%s1461_s26 + $0x58] sm:$0xff] %v965_v33 }
  0xfc   : > { %v774_v36 = vpop.f32.mrf.mxu2 }
  0xfd   : > { %v798_v37 = vadd.f32 %v774_v36, %v643_v35  ;;  %v922_v38 = vpop.f32.mrf.mxu3 }
  0xff   : > { %v946_v39 = vadd.f32 %v922_v38, %v798_v37 }
 0x100   : > { %v645_v40 = vpop.f32.mrf.mxu1 }
 0x101   : > { %v966_v41 = vadd.f32 %v1456_v5, %v946_v39  ;;  %v532_v42 = vpop.f32.mrf.mxu0 }
 0x102   : > { %v646_v43 = vadd.f32 %v645_v40, %v532_v42 }
 0x103   : > { %982 = vst [vmem:[%s1461_s26 + $0x60] sm:$0xff] %v966_v41 }
 0x104   : > { %v777_v44 = vpop.f32.mrf.mxu2 }
 0x105   : > { %v799_v45 = vadd.f32 %v777_v44, %v646_v43  ;;  %v925_v46 = vpop.f32.mrf.mxu3 }
 0x107   : > { %v947_v47 = vadd.f32 %v925_v46, %v799_v45 }
 0x108   : > { %v648_v48 = vpop.f32.mrf.mxu1 }
 0x109   : > { %v967_v49 = vadd.f32 %v1456_v5, %v947_v47  ;;  %v535_v50 = vpop.f32.mrf.mxu0 }
 0x10a   : > { %v649_v51 = vadd.f32 %v648_v48, %v535_v50 }
 0x10b   : > { %983 = vst [vmem:[%s1461_s26 + $0x68] sm:$0xff] %v967_v49 }
 0x10c   : > { %v780_v52 = vpop.f32.mrf.mxu2 }
 0x10d   : > { %v800_v53 = vadd.f32 %v780_v52, %v649_v51  ;;  %v928_v54 = vpop.f32.mrf.mxu3 }
 0x10f   : > { %v948_v55 = vadd.f32 %v928_v54, %v800_v53 }
 0x110   : > { %v651_v56 = vpop.f32.mrf.mxu1 }
 0x111   : > { %v968_v57 = vadd.f32 %v1456_v5, %v948_v55  ;;  %v538_v58 = vpop.f32.mrf.mxu0 }
 0x112   : > { %v652_v59 = vadd.f32 %v651_v56, %v538_v58 }
 0x113   : > { %984 = vst [vmem:[%s1461_s26 + $0x70] sm:$0xff] %v968_v57 }
 0x114   : > { %v783_v60 = vpop.f32.mrf.mxu2 }
 0x115   : > { %v801_v61 = vadd.f32 %v783_v60, %v652_v59  ;;  %v931_v62 = vpop.f32.mrf.mxu3 }
 0x117   : > { %v949_v63 = vadd.f32 %v931_v62, %v801_v61 }
 0x119   : > { %v969_v0 = vadd.f32 %v1456_v5, %v949_v63 }
 0x11b   : > { %985 = vst [vmem:[%s1461_s26 + $0x78] sm:$0xff] %v969_v0 }
 0x11c PF: > { %s14_s17 = sadd.s32 1, %s1268_s17   ;;  %s1509_s15 = smov %s1264_s16 }
 0x11d   : > { %p11_p5 = scmp.ge.s32.totalorder %s14_s17, 4   ;;  %s1510_s16 = smov %s1512_s18 }
 0x11f   :  { %13 = sbr.rel (!%p11_p5) target bundleno = 2 (0x2), region = 78 }

</bundles_post_ra>
